<compile_context>
chip_gen: v5e
topology: v5e:2x2
jax: 0.10.0
libtpu: 0.0.40
codegen_flags: <defaults>
</compile_context>

<pallas_src>
import functools
import math

import jax
import jax.numpy as jnp
from jax.experimental import pallas as pl
from jax.experimental.pallas import tpu as pltpu

BN_EPS = 1e-5


# --------------------- weight folding: 3x3 conv as band matmuls --------------------- #
def _band_matrices(w_hwio, W):
    """Fold a (3,3,Cin,Cout) HWIO kernel into 3 block-Toeplitz matrices so the 3x3
    SAME conv on a zero-framed activation z (z[i, j*Cin+c] = y_pad[i, j, c]) becomes
        out[h, wo*Cout+co] = sum_dh (z[h+dh, :] @ M[dh])[wo*Cout+co]."""
    KH, KW, Cin, Cout = w_hwio.shape
    m = jnp.zeros((KH, (W + 2) * Cin, W * Cout), w_hwio.dtype)
    for dw in range(KW):
        for wo in range(W):
            m = m.at[:, (wo + dw) * Cin:(wo + dw + 1) * Cin,
                     wo * Cout:(wo + 1) * Cout].set(w_hwio[:, dw])
    return m


# ---------------------- fused BN-affine + ReLU + 3x3 conv kernel -------------------- #
def _bn_relu_conv3x3_kernel(x_ref, ss_ref, m_ref, o_ref, z_ref, *, h, w, cin, cout):
    # Zero frame of the padded activation.  Re-written every step: under a megacore
    # "parallel" split each core has its own scratch, so an init-once-at-step-0
    # guard is unsafe.  The frame is only 2 rows + 2 Cin-wide lane strips -- tiny.
    z_ref[0:1, :] = jnp.zeros((1, (w + 2) * cin), jnp.float32)
    z_ref[h + 1:h + 2, :] = jnp.zeros((1, (w + 2) * cin), jnp.float32)
    z_ref[1:h + 1, 0:cin] = jnp.zeros((h, cin), jnp.float32)
    z_ref[1:h + 1, (w + 1) * cin:(w + 2) * cin] = jnp.zeros((h, cin), jnp.float32)

    # Fused BatchNorm affine (pre-folded scale/shift) + ReLU, staged lane-dense into
    # the interior of the zero-framed scratch.
    scale = ss_ref[0:1, :]                                   # (1, W*Cin)
    shift = ss_ref[1:2, :]
    y = jnp.maximum(x_ref[0] * scale + shift, 0.0)           # (H, W*Cin) f32
    z_ref[1:h + 1, cin:(w + 1) * cin] = y

    # 3x3 conv = 3 block-Toeplitz matmuls over lane-major views, f32 accumulate.
    # (f32 operands kept for strict 1e-4 parity with the f32 reference.)
    acc = jnp.zeros((h, w * cout), jnp.float32)
    for dh in range(3):
        acc = acc + jnp.dot(z_ref[dh:dh + h, :], m_ref[dh],
                            preferred_element_type=jnp.float32)
    o_ref[...] = acc.reshape(1, h, w * cout)


def _bn_relu_conv3x3(x_flat, ss, m, H, W, Cin, Cout):
    """x_flat: (N, H, W*Cin), ss: (2, W*Cin) folded scale/shift, m: band matrices."""
    N = x_flat.shape[0]
    kernel = functools.partial(_bn_relu_conv3x3_kernel, h=H, w=W, cin=Cin, cout=Cout)

    flops = 2 * N * 3 * H * ((W + 2) * Cin) * (W * Cout)
    bytes_accessed = (N * H * W * Cin * 4          # activation reads (no halos)
                      + N * H * W * Cout * 4       # unpadded output writes
                      + 3 * (W + 2) * Cin * W * Cout * 4   # resident band weights
                      + 2 * W * Cin * 4)           # folded BN scale/shift

    # VMEM footprint (double-buffered blocks + scratch); must clear the smallest
    # per-generation budget (v7x: 64 MiB physical / 32 MiB default scoped).
    vmem_bytes = (2 * H * W * Cin * 4 + 2 * H * W * Cout * 4
                  + 2 * 3 * (W + 2) * Cin * W * Cout * 4
                  + 2 * 2 * W * Cin * 4
                  + (H + 2) * (W + 2) * Cin * 4)
    assert vmem_bytes < 24 * 1024 * 1024, vmem_bytes
    # TODO(synk): for large W / Cin (real DenseNet stage sizes) the band matrices no
    # longer fit VMEM; that regime needs a width-tiled (or Cin-lane-padded 9-tap) path.

    return pl.pallas_call(
        kernel,
        out_shape=jax.ShapeDtypeStruct((N, H, W * Cout), jnp.float32),
        grid=(N,),
        in_specs=[
            pl.BlockSpec((1, H, W * Cin), lambda n: (n, 0, 0)),          # activation
            pl.BlockSpec((2, W * Cin), lambda n: (0, 0)),                # scale/shift
            pl.BlockSpec((3, (W + 2) * Cin, W * Cout), lambda n: (0, 0, 0)),  # weights
        ],
        out_specs=pl.BlockSpec((1, H, W * Cout), lambda n: (n, 0, 0)),
        scratch_shapes=[pltpu.VMEM((H + 2, (W + 2) * Cin), jnp.float32)],
        compiler_params=pltpu.CompilerParams(
            dimension_semantics=("parallel",)),       # >=2 steps when N>=2 (v7x 2 TCs)
        cost_estimate=pl.CostEstimate(flops=flops, transcendentals=0,
                                      bytes_accessed=bytes_accessed),
    )(x_flat, ss, m)


# ------------------------------------ DenseBlock ------------------------------------ #
def dense_layer_forward(x_nhwc, params):
    """One layer: BatchNorm2d (training-mode batch stats) -> ReLU -> Conv2d 3x3."""
    gamma, beta, w_hwio = params                     # w_hwio: (3, 3, Cin, Cout)
    N, H, W, Cin = x_nhwc.shape
    Cout = w_hwio.shape[-1]

    x_nhwc = x_nhwc.astype(jnp.float32)

    # Batch statistics (biased variance, like torch BN in train mode).  Centered
    # two-pass jnp reduction in the wrapper (review rec #7): XLA fuses it, and it
    # avoids the E[x^2]-E[x]^2 cancellation of the old Pallas stats pass.
    mean = jnp.mean(x_nhwc, axis=(0, 1, 2))
    var = jnp.mean(jnp.square(x_nhwc - mean), axis=(0, 1, 2))
    scale_c = gamma * jax.lax.rsqrt(var + BN_EPS)
    shift_c = beta - mean * scale_c

    # Lane-flattened layouts for the kernel.
    x_flat = x_nhwc.reshape(N, H, W * Cin)
    ss = jnp.stack([jnp.tile(scale_c, W), jnp.tile(shift_c, W)])         # (2, W*Cin)
    m = _band_matrices(w_hwio.astype(jnp.float32), W)    # (3, (W+2)*Cin, W*Cout)

    out_flat = _bn_relu_conv3x3(x_flat, ss, m, H, W, Cin, Cout)
    return out_flat.reshape(N, H, W, Cout)


def dense_block_forward(x_nchw, layer_params):
    x = jnp.transpose(x_nchw, (0, 2, 3, 1))          # NCHW -> NHWC
    for p in layer_params:
        x = dense_layer_forward(x, p)
    return jnp.transpose(x, (0, 3, 1, 2))            # NHWC -> NCHW (match PyTorch)


def init_dense_block_params(key, num_convs, in_channels, growth_rate):
    """BN: gamma=1, beta=0 (PyTorch default init); Conv weight: kaiming-uniform-ish."""
    params = []
    for i in range(num_convs):
        cin = in_channels + i * growth_rate
        key, wk = jax.random.split(key)
        gamma = jnp.ones((cin,), jnp.float32)
        beta = jnp.zeros((cin,), jnp.float32)
        bound = 1.0 / math.sqrt(cin * 9)
        w = jax.random.uniform(wk, (3, 3, cin, growth_rate), jnp.float32,
                               minval=-bound, maxval=bound)
        params.append((gamma, beta, w))
    return params


# ------------------------------------- reference ------------------------------------ #
def reference_forward(x_nchw, layer_params):
    x = jnp.transpose(x_nchw, (0, 2, 3, 1))
    for gamma, beta, w in layer_params:
        mean = jnp.mean(x, axis=(0, 1, 2), keepdims=True)
        var = jnp.mean(jnp.square(x - mean), axis=(0, 1, 2), keepdims=True)
        y = (x - mean) / jnp.sqrt(var + BN_EPS) * gamma + beta
        y = jnp.maximum(y, 0.0)
        x = jax.lax.conv_general_dilated(
            y, w, window_strides=(1, 1), padding="SAME",
            dimension_numbers=("NHWC", "HWIO", "NHWC"))
    return jnp.transpose(x, (0, 3, 1, 2))


if __name__ == "__main__":
    # TODO(synk): the reference module's Sequential chaining is only shape-consistent
    # for num_convs == 1 (layer i expects in_channels + i*growth_rate input channels
    # but receives growth_rate), so the demo uses num_convs=1.
    key = jax.random.PRNGKey(0)
    fwd = jax.jit(dense_block_forward)

    configs = [
        # (num_convs, in_channels, growth_rate, N, H, W)
        (1, 4, 8, 2, 16, 16),   # W*Cout = 128: exactly lane-dense output, 2 grid steps
        (1, 8, 8, 1, 8, 8),     # W*Cout = 64: full-dim (unpadded) block, 1 grid step
    ]
    for (num_convs, cin, growth, N, H, W) in configs:
        key, kx, kp = jax.random.split(key, 3)
        x = jax.random.normal(kx, (N, cin, H, W), jnp.float32)
        params = init_dense_block_params(kp, num_convs, cin, growth)

        out = jax.block_until_ready(fwd(x, params))
        ref = jax.block_until_ready(reference_forward(x, params))

        assert out.shape == (N, growth, H, W), out.shape
        err = float(jnp.abs(out - ref).max())
        assert jnp.allclose(out, ref, atol=1e-4, rtol=1e-4), err

    print("KERNEL_OK")
</pallas_src>

<mosaic_0001>
module attributes {stable_mosaic.version = 11 : i64} {
  func.func @_bn_relu_conv3x3_kernel(%arg0: i32, %arg1: memref<1x16x64xf32, #tpu.memory_space<vmem>>, %arg2: memref<2x64xf32, #tpu.memory_space<vmem>>, %arg3: memref<3x72x128xf32, #tpu.memory_space<vmem>>, %arg4: memref<1x16x128xf32, #tpu.memory_space<vmem>>, %arg5: memref<18x72xf32, #tpu.memory_space<vmem>>) attributes {dimension_semantics = [#tpu.dimension_semantics<parallel>], iteration_bounds = array<i64: 2>, scalar_prefetch = 0 : i64, scratch_operands = 1 : i64, tpu.core_type = #tpu.core_type<tc>, window_params = [{transform_indices = @transform_0, window_bounds = array<i64: 1, 16, 64>}, {pipeline_mode = #tpu.pipeline_mode<synchronous>, transform_indices = @transform_1, window_bounds = array<i64: 2, 64>}, {pipeline_mode = #tpu.pipeline_mode<synchronous>, transform_indices = @transform_2, window_bounds = array<i64: 3, 72, 128>}, {transform_indices = @transform_3, window_bounds = array<i64: 1, 16, 128>}]} {
    %cst = arith.constant 0.000000e+00 : f32
    %0 = vector.broadcast %cst : f32 to vector<1x72xf32>
    %c0 = arith.constant 0 : index
    %c0_0 = arith.constant 0 : index
    %1 = vector.load %arg5[%c0, %c0_0] : memref<18x72xf32, #tpu.memory_space<vmem>>, vector<1x72xf32>
    tpu.vector_store %arg5[%c0, %c0_0], %0 {strides = array<i32>} : memref<18x72xf32, #tpu.memory_space<vmem>>, vector<1x72xf32>,
    %cst_1 = arith.constant 0.000000e+00 : f32
    %2 = vector.broadcast %cst_1 : f32 to vector<1x72xf32>
    %c17 = arith.constant 17 : index
    %c0_2 = arith.constant 0 : index
    %3 = vector.load %arg5[%c17, %c0_2] : memref<18x72xf32, #tpu.memory_space<vmem>>, vector<1x72xf32>
    tpu.vector_store %arg5[%c17, %c0_2], %2 {strides = array<i32>} : memref<18x72xf32, #tpu.memory_space<vmem>>, vector<1x72xf32>,
    %cst_3 = arith.constant 0.000000e+00 : f32
    %4 = vector.broadcast %cst_3 : f32 to vector<16x4xf32>
    %c1 = arith.constant 1 : index
    %c0_4 = arith.constant 0 : index
    %5 = vector.load %arg5[%c1, %c0_4] : memref<18x72xf32, #tpu.memory_space<vmem>>, vector<16x4xf32>
    tpu.vector_store %arg5[%c1, %c0_4], %4 {strides = array<i32>} : memref<18x72xf32, #tpu.memory_space<vmem>>, vector<16x4xf32>,
    %cst_5 = arith.constant 0.000000e+00 : f32
    %6 = vector.broadcast %cst_5 : f32 to vector<16x4xf32>
    %c1_6 = arith.constant 1 : index
    %c68 = arith.constant 68 : index
    %7 = vector.load %arg5[%c1_6, %c68] : memref<18x72xf32, #tpu.memory_space<vmem>>, vector<16x4xf32>
    tpu.vector_store %arg5[%c1_6, %c68], %6 {strides = array<i32>} : memref<18x72xf32, #tpu.memory_space<vmem>>, vector<16x4xf32>,
    %c0_7 = arith.constant 0 : index
    %c0_8 = arith.constant 0 : index
    %8 = vector.load %arg2[%c0_7, %c0_8] : memref<2x64xf32, #tpu.memory_space<vmem>>, vector<1x64xf32>
    %c1_9 = arith.constant 1 : index
    %c0_10 = arith.constant 0 : index
    %9 = vector.load %arg2[%c1_9, %c0_10] : memref<2x64xf32, #tpu.memory_space<vmem>>, vector<1x64xf32>
    %c0_11 = arith.constant 0 : index
    %c0_12 = arith.constant 0 : index
    %c0_13 = arith.constant 0 : index
    %10 = vector.load %arg1[%c0_11, %c0_12, %c0_13] : memref<1x16x64xf32, #tpu.memory_space<vmem>>, vector<1x16x64xf32>
    %11 = vector.shape_cast %10 : vector<1x16x64xf32> to vector<16x64xf32>
    %12 = vector.broadcast %8 : vector<1x64xf32> to vector<16x64xf32>
    %13 = arith.mulf %11, %12 : vector<16x64xf32>
    %14 = vector.broadcast %9 : vector<1x64xf32> to vector<16x64xf32>
    %15 = arith.addf %13, %14 : vector<16x64xf32>
    %cst_14 = arith.constant 0.000000e+00 : f32
    %16 = vector.broadcast %cst_14 : f32 to vector<16x64xf32>
    %17 = arith.maximumf %15, %16 : vector<16x64xf32>
    %c1_15 = arith.constant 1 : index
    %c4 = arith.constant 4 : index
    %18 = vector.load %arg5[%c1_15, %c4] : memref<18x72xf32, #tpu.memory_space<vmem>>, vector<16x64xf32>
    tpu.vector_store %arg5[%c1_15, %c4], %17 {strides = array<i32>} : memref<18x72xf32, #tpu.memory_space<vmem>>, vector<16x64xf32>,
    %cst_16 = arith.constant 0.000000e+00 : f32
    %19 = vector.broadcast %cst_16 : f32 to vector<16x128xf32>
    %c0_17 = arith.constant 0 : index
    %c0_18 = arith.constant 0 : index
    %20 = vector.load %arg5[%c0_17, %c0_18] : memref<18x72xf32, #tpu.memory_space<vmem>>, vector<16x72xf32>
    %c0_19 = arith.constant 0 : index
    %c0_20 = arith.constant 0 : index
    %c0_21 = arith.constant 0 : index
    %21 = vector.load %arg3[%c0_19, %c0_20, %c0_21] : memref<3x72x128xf32, #tpu.memory_space<vmem>>, vector<1x72x128xf32>
    %22 = vector.shape_cast %21 : vector<1x72x128xf32> to vector<72x128xf32>
    %cst_22 = arith.constant dense<0.000000e+00> : vector<16x128xf32>
    %23 = tpu.matmul %20, %22, %cst_22 {dimension_numbers = #tpu.dot_dimension_numbers<[1], [0], [0], [1], [0, 0, 1, 1], [], []>} : vector<16x72xf32>, vector<72x128xf32>, vector<16x128xf32> -> vector<16x128xf32>
    %24 = arith.addf %19, %23 : vector<16x128xf32>
    %c1_23 = arith.constant 1 : index
    %c0_24 = arith.constant 0 : index
    %25 = vector.load %arg5[%c1_23, %c0_24] : memref<18x72xf32, #tpu.memory_space<vmem>>, vector<16x72xf32>
    %c1_25 = arith.constant 1 : index
    %c0_26 = arith.constant 0 : index
    %c0_27 = arith.constant 0 : index
    %26 = vector.load %arg3[%c1_25, %c0_26, %c0_27] : memref<3x72x128xf32, #tpu.memory_space<vmem>>, vector<1x72x128xf32>
    %27 = vector.shape_cast %26 : vector<1x72x128xf32> to vector<72x128xf32>
    %cst_28 = arith.constant dense<0.000000e+00> : vector<16x128xf32>
    %28 = tpu.matmul %25, %27, %cst_28 {dimension_numbers = #tpu.dot_dimension_numbers<[1], [0], [0], [1], [0, 0, 1, 1], [], []>} : vector<16x72xf32>, vector<72x128xf32>, vector<16x128xf32> -> vector<16x128xf32>
    %29 = arith.addf %24, %28 : vector<16x128xf32>
    %c2 = arith.constant 2 : index
    %c0_29 = arith.constant 0 : index
    %30 = vector.load %arg5[%c2, %c0_29] : memref<18x72xf32, #tpu.memory_space<vmem>>, vector<16x72xf32>
    %c2_30 = arith.constant 2 : index
    %c0_31 = arith.constant 0 : index
    %c0_32 = arith.constant 0 : index
    %31 = vector.load %arg3[%c2_30, %c0_31, %c0_32] : memref<3x72x128xf32, #tpu.memory_space<vmem>>, vector<1x72x128xf32>
    %32 = vector.shape_cast %31 : vector<1x72x128xf32> to vector<72x128xf32>
    %cst_33 = arith.constant dense<0.000000e+00> : vector<16x128xf32>
    %33 = tpu.matmul %30, %32, %cst_33 {dimension_numbers = #tpu.dot_dimension_numbers<[1], [0], [0], [1], [0, 0, 1, 1], [], []>} : vector<16x72xf32>, vector<72x128xf32>, vector<16x128xf32> -> vector<16x128xf32>
    %34 = arith.addf %29, %33 : vector<16x128xf32>
    %35 = vector.shape_cast %34 : vector<16x128xf32> to vector<1x16x128xf32>
    %c0_34 = arith.constant 0 : index
    %c0_35 = arith.constant 0 : index
    %c0_36 = arith.constant 0 : index
    %36 = vector.load %arg4[%c0_34, %c0_35, %c0_36] : memref<1x16x128xf32, #tpu.memory_space<vmem>>, vector<1x16x128xf32>
    tpu.vector_store %arg4[%c0_34, %c0_35, %c0_36], %35 {strides = array<i32>} : memref<1x16x128xf32, #tpu.memory_space<vmem>>, vector<1x16x128xf32>,
    return
  }
  func.func @transform_0(%arg0: i32) -> (i32, i32, i32) {
    %c0_i32 = arith.constant 0 : i32
    %c0_i32_0 = arith.constant 0 : i32
    %c0_i32_1 = arith.constant 0 : i32
    return %arg0, %c0_i32, %c0_i32_0 : i32, i32, i32
  }
  func.func @transform_1(%arg0: i32) -> (i32, i32) {
    %c0_i32 = arith.constant 0 : i32
    %c0_i32_0 = arith.constant 0 : i32
    %c0_i32_1 = arith.constant 0 : i32
    return %c0_i32, %c0_i32_0 : i32, i32
  }
  func.func @transform_2(%arg0: i32) -> (i32, i32, i32) {
    %c0_i32 = arith.constant 0 : i32
    %c0_i32_0 = arith.constant 0 : i32
    %c0_i32_1 = arith.constant 0 : i32
    %c0_i32_2 = arith.constant 0 : i32
    return %c0_i32, %c0_i32_0, %c0_i32_1 : i32, i32, i32
  }
  func.func @transform_3(%arg0: i32) -> (i32, i32, i32) {
    %c0_i32 = arith.constant 0 : i32
    %c0_i32_0 = arith.constant 0 : i32
    %c0_i32_1 = arith.constant 0 : i32
    return %arg0, %c0_i32, %c0_i32_0 : i32, i32, i32
  }
}

</mosaic_0001>

<bundles_post_ra>
// kernel: tile.17
= control target key start
LH: loop header
LB: loop body
LE: loop exit
PB: predicated region body
PF: predicated region fallthrough
CT: control target
= control target key end

     0   :  { %s28_s0 = inlined_call_operand.vmem [shape: f32[4], index: 0, kind: input, shape index: {}]   ;;  %s29_s1 = inlined_call_operand.vmem [shape: f32[16,4], index: 1, kind: output, shape index: {}]  }
   0x1   :  { %v4_v0 = vld [vmem:[%s28_s0] ss:$0 sm:$0xff] }
   0x2   :  { %5 = vst [vmem:[%s29_s1] sm:$0xff] %v4_v0 }
   0x3   :  { %8 = vst [vmem:[%s29_s1 + $0x8] sm:$0xff] %v4_v0 }

// kernel: tile.19
= control target key start
LH: loop header
LB: loop body
LE: loop exit
PB: predicated region body
PF: predicated region fallthrough
CT: control target
= control target key end

     0   :  { %s131_s10 = smov 60   ;;  %s132_s11 = smov 52   ;;  %vm3_vm0 = vcmask 31744   ;;  %vm9_vm1 = vcmask 523744   ;;  %vm15_vm2 = vcmask 490944   ;;  %vm21_vm3 = vcmask 458144   ;;  %s207_s0 = inlined_call_operand.vmem [shape: f32[16,4], index: 0, kind: input, shape index: {}]   ;;  %s208_s1 = inlined_call_operand.vmem [shape: f32[1,64], index: 1, kind: output, shape index: {}]  }
   0x1   :  { %v101_v0 = vld [vmem:[%s207_s0 + $0xf] sm:$0x1]   ;;  %v103_v1 = vld [vmem:[%s207_s0 + $0xd] sm:$0x1]   ;;  %v105_v2 = vld [vmem:[%s207_s0 + $0xb] sm:$0x1]  }
   0x2   :  { %7 = vrot.lane.b32.xlu0 %v101_v0, %s131_s10  ;;  %19 = vrot.lane.b32.xlu1 %v103_v1, %s132_s11  ;;  %s133_s14 = smov 44   ;;  %v102_v3 = vld [vmem:[%s207_s0 + $0xe] sm:$0x1]   ;;  %v104_v4 = vld [vmem:[%s207_s0 + $0xc] sm:$0x1]   ;;  %s134_s19 = smov 56  }
   0x3   :  { %31 = vrot.lane.b32.xlu2 %v105_v2, %s133_s14  ;;  %s135_s20 = smov 48   ;;  %v106_v5 = vld [vmem:[%s207_s0 + $0xa] sm:$0x1]   ;;  %s136_s23 = smov 40   ;;  %v107_v6 = vld [vmem:[%s207_s0 + $0x9] sm:$0x1]  }
   0x4   :  { %v108_v7 = vld [vmem:[%s207_s0 + $0x8] sm:$0x1]   ;;  %s137_s28 = smov 36   ;;  %s138_s29 = smov 32   ;;  %v109_v8 = vld [vmem:[%s207_s0 + $0x7] sm:$0x1]  }
   0x5   :  { %s139_s3 = smov 28   ;;  %v110_v9 = vld [vmem:[%s207_s0 + $0x6] sm:$0x1]   ;;  %v111_v10 = vld [vmem:[%s207_s0 + $0x5] sm:$0x1]   ;;  %s140_s8 = smov 24  }
   0x6   :  { %s141_s9 = smov 20   ;;  %v112_v11 = vld [vmem:[%s207_s0 + $0x4] sm:$0x1]   ;;  %s142_s12 = smov 16   ;;  %v113_v12 = vld [vmem:[%s207_s0 + $0x3] sm:$0x1]  }
   0x7   :  { %v114_v13 = vld [vmem:[%s207_s0 + $0x2] sm:$0x1]   ;;  %s143_s17 = smov 12   ;;  %s144_s18 = smov 8   ;;  %v115_v14 = vld [vmem:[%s207_s0 + $0x1] sm:$0x1]  }
   0x8   :  { %s145_s21 = smov 4   ;;  %v2_v15 = vld [vmem:[%s207_s0] sm:$0x1]   ;;  %vm27_vm4 = vcmask 425344   ;;  %vm33_vm5 = vcmask 392544   ;;  %vm39_vm6 = vcmask 359744  }
   0x9   :  { %4 = vst.msk [vmem:[#allocation0] sm:$0x1] %vm3_vm0, %v2_v15   ;;  %vm45_vm7 = vcmask 326944   ;;  %vm51_vm8 = vcmask 294144   ;;  %vm57_vm9 = vcmask 261344   ;;  %vm63_vm10 = vcmask 228544  }
   0xa   :  { %13 = vrot.lane.b32.xlu0 %v102_v3, %s134_s19  ;;  %25 = vrot.lane.b32.xlu1 %v104_v4, %s135_s20  ;;  %vm69_vm11 = vcmask 195744   ;;  %vm75_vm12 = vcmask 162944   ;;  %vm81_vm13 = vcmask 130144   ;;  %vm87_vm14 = vcmask 97344  }
   0xb   :  { %37 = vrot.lane.b32.xlu2 %v106_v5, %s136_s23  ;;  %vm93_vm15 = vcmask 64544  }
  0x12   :  { %43 = vrot.lane.b32.xlu0 %v107_v6, %s137_s28  ;;  %49 = vrot.lane.b32.xlu1 %v108_v7, %s138_s29 }
  0x13   :  { %55 = vrot.lane.b32.xlu2 %v109_v8, %s139_s3 }
  0x1a   :  { %61 = vrot.lane.b32.xlu0 %v110_v9, %s140_s8  ;;  %67 = vrot.lane.b32.xlu1 %v111_v10, %s141_s9 }
  0x1b   :  { %73 = vrot.lane.b32.xlu2 %v112_v11, %s142_s12 }
  0x22   :  { %79 = vrot.lane.b32.xlu0 %v113_v12, %s143_s17  ;;  %85 = vrot.lane.b32.xlu1 %v114_v13, %s144_s18 }
  0x23   :  { %91 = vrot.lane.b32.xlu2 %v115_v14, %s145_s21 }
  0x5d   :  { %v32_v16 = vpop.permute.xlu2 %31  }
  0x65   :  { %v38_v17 = vpop.permute.xlu2 %37  }
  0x6d   :  { %v56_v18 = vpop.permute.xlu2 %55  }
  0x74   :  { %v8_v19 = vpop.permute.xlu0 %7   ;;  %v20_v20 = vpop.permute.xlu1 %19  }
  0x75   :  { %10 = vst.msk [vmem:[#allocation0] sm:$0x1] %vm9_vm1, %v8_v19   ;;  %v74_v21 = vpop.permute.xlu2 %73  }
  0x7c   :  { %v14_v22 = vpop.permute.xlu0 %13   ;;  %v26_v23 = vpop.permute.xlu1 %25  }
  0x7d   :  { %16 = vst.msk [vmem:[#allocation0] sm:$0x1] %vm15_vm2, %v14_v22   ;;  %v92_v24 = vpop.permute.xlu2 %91  }
  0x7e   :  { %22 = vst.msk [vmem:[#allocation0] sm:$0x1] %vm21_vm3, %v20_v20  }
  0x7f   :  { %28 = vst.msk [vmem:[#allocation0] sm:$0x1] %vm27_vm4, %v26_v23  }
  0x80   :  { %34 = vst.msk [vmem:[#allocation0] sm:$0x1] %vm33_vm5, %v32_v16  }
  0x81   :  { %40 = vst.msk [vmem:[#allocation0] sm:$0x1] %vm39_vm6, %v38_v17  }
  0x84   :  { %v44_v25 = vpop.permute.xlu0 %43   ;;  %v50_v26 = vpop.permute.xlu1 %49  }
  0x85   :  { %46 = vst.msk [vmem:[#allocation0] sm:$0x1] %vm45_vm7, %v44_v25  }
  0x86   :  { %52 = vst.msk [vmem:[#allocation0] sm:$0x1] %vm51_vm8, %v50_v26  }
  0x87   :  { %58 = vst.msk [vmem:[#allocation0] sm:$0x1] %vm57_vm9, %v56_v18  }
  0x8c   :  { %v62_v27 = vpop.permute.xlu0 %61   ;;  %v68_v28 = vpop.permute.xlu1 %67  }
  0x8d   :  { %64 = vst.msk [vmem:[#allocation0] sm:$0x1] %vm63_vm10, %v62_v27  }
  0x8e   :  { %70 = vst.msk [vmem:[#allocation0] sm:$0x1] %vm69_vm11, %v68_v28  }
  0x8f   :  { %76 = vst.msk [vmem:[#allocation0] sm:$0x1] %vm75_vm12, %v74_v21  }
  0x94   :  { %v80_v29 = vpop.permute.xlu0 %79   ;;  %v86_v30 = vpop.permute.xlu1 %85  }
  0x95   :  { %82 = vst.msk [vmem:[#allocation0] sm:$0x1] %vm81_vm13, %v80_v29  }
  0x96   :  { %88 = vst.msk [vmem:[#allocation0] sm:$0x1] %vm87_vm14, %v86_v30  }
  0x97   :  { %94 = vst.msk [vmem:[#allocation0] sm:$0x1] %vm93_vm15, %v92_v24  }
  0x9e   :  { %v97_v31 = vld [vmem:[#allocation0] sm:$0x1] }
  0x9f   :  { %100 = vst [vmem:[%s208_s1] sm:$0x1] %v97_v31 }

// kernel: dense_block_forward.1
= control target key start
LH: loop header
LB: loop body
LE: loop exit
PB: predicated region body
PF: predicated region fallthrough
CT: control target
= control target key end

     0   :  { %s473_s12 = smov 0   ;;  %s590_s0 = inlined_call_operand.vmem [shape: f32[2,16,64], index: 0, kind: input, shape index: {}]   ;;  %s591_s1 = inlined_call_operand.vmem [shape: f32[2,64], index: 1, kind: input, shape index: {}]   ;;  %s592_s2 = inlined_call_operand.vmem [shape: f32[3,72,128], index: 2, kind: input, shape index: {}]   ;;  %s593_s3 = inlined_call_operand.vmem [shape: f32[2,16,128], index: 3, kind: output, shape index: {}]  }
   0x1 LB: > { %s385_s13 = sadd.s32 4294967295, %s449_s12   ;;  %p389_p0 = scmp.ge.s32.totalorder %s449_s12, 1  ;;  %s449_s12 = sphi %s473_s12, %s13_s12  }
   0x2   : > { %p137_p1 = scmp.lt.s32.totalorder %s449_s12, 3 }
   0x4   : > { %p138_p2 = pnand %p389_p0, %p137_p1 }
   0x5   : > { %p161_p3 = scmp.lt.s32.totalorder (!%p138_p2), %s385_s13, 1  ;;  %s452_s19 = smov (!%p138_p2), 4  }
   0x6   : > { %141 = sbr.rel (%p138_p2) target bundleno = 298 (0x12a), region = 32 }
   0xb   : > { %v402_v0 = vld [vmem:[%s592_s2 + $0x88] sm:$0xff]  ;;  %vm171_vm0 = vcmask 581632   ;;  %s595_s13 = smov (!%p161_p3, %s385_s13), 1  ;;  %v213_v1 = vld [vmem:[%s592_s2 + $0x40] sm:$0xff]  ;;  %v212_v3 = vld [vmem:[%s592_s2 + $0x38] sm:$0xff]  ;;  %vm174_vm1 = vcmask 31744  }
   0xc   : > { %240 = vmatpush.msra.mxu0 %v402_v0  ;;  %v401_v2 = vld [vmem:[%s592_s2 + $0x80] sm:$0xff]  ;;  %422 = vmatpush.msra.mxu3 %v402_v0  ;;  %v400_v5 = vld [vmem:[%s592_s2 + $0x78] sm:$0xff]  ;;  %v451_v6 = vmov 0.0   ;;  %vm177_vm2 = vcmask 589344   ;;  %s420_s26 = sshll.u32 %s595_s13, 4  ;;  %v211_v7 = vld [vmem:[%s592_s2 + $0x30] sm:$0xff] }
   0xd   : > { %v441_v4 = vld [vmem:[%s591_s1] ss:$0 sm:$0xff]  ;;  %269 = vmatpush.msra.mxu1 %v213_v1  ;;  %172 = vst.msk [vmem:[#allocation2] sm:$0x1] %vm171_vm0, %v451_v6  ;;  %s165_s4 = scalar_lea.vmem %s590_s0, %s420_s26  ;;  %v442_v8 = vld [vmem:[%s591_s1 + $0x1] ss:$0 sm:$0xff] }
   0xe   : > { %241 = vmatpush.msra.mxu0 %v401_v2  ;;  %173 = vst.msk [vmem:[#allocation2 + $0x11] sm:$0x1] %vm171_vm0, %v451_v6  ;;  %423 = vmatpush.msra.mxu3 %v401_v2  ;;  %v399_v9 = vld [vmem:[%s592_s2 + $0x70] sm:$0xff]  ;;  %v182_v11 = vld [vmem:[%s165_s4] sm:$0xff]  ;;  %v183_v12 = vld [vmem:[%s165_s4 + $0x8] sm:$0xff]  ;;  %vm200_vm3 = vcmask 556064   ;;  %s170_s4 = scalar_lea.vmem %s593_s3, %s420_s26 }
   0xf   : > { %270 = vmatpush.msra.mxu1 %v212_v3  ;;  %v415_v10 = vld [vmem:[%s592_s2 + $0xd0] sm:$0xff]  ;;  %175 = vst.msk [vmem:[#allocation2 + $0x1] sm:$0xff] %vm174_vm1, %v451_v6  ;;  %v210_v13 = vld [vmem:[%s592_s2 + $0x28] sm:$0xff]  ;;  %v185_v14 = vmul.f32 %v441_v4, %v182_v11  ;;  %v209_v16 = vld [vmem:[%s592_s2 + $0x20] sm:$0xff]  ;;  %v186_v18 = vmul.f32 %v441_v4, %v183_v12  ;;  %vm226_vm4 = vcmask 588800  }
  0x10   : > { %242 = vmatpush.msra.mxu0 %v400_v5  ;;  %310 = vmatpush.msra.mxu2 %v415_v10  ;;  %178 = vst.msk [vmem:[#allocation2 + $0x1] sm:$0xff] %vm177_vm2, %v451_v6  ;;  %v398_v15 = vld [vmem:[%s592_s2 + $0x68] sm:$0xff]  ;;  %v397_v22 = vld [vmem:[%s592_s2 + $0x60] sm:$0xff]  ;;  %v208_v23 = vld [vmem:[%s592_s2 + $0x18] sm:$0xff] }
  0x11   : > { %271 = vmatpush.msra.mxu1 %v211_v7  ;;  %176 = vst.msk [vmem:[#allocation2 + $0x9] sm:$0xff] %vm174_vm1, %v451_v6  ;;  %424 = vmatpush.msra.mxu3 %v400_v5  ;;  %v188_v17 = vadd.f32 %v442_v8, %v185_v14  ;;  %v189_v20 = vadd.f32 %v442_v8, %v186_v18  ;;  %v414_v24 = vld [vmem:[%s592_s2 + $0xc8] sm:$0xff]  ;;  %v396_v25 = vld [vmem:[%s592_s2 + $0x58] sm:$0xff]  ;;  %v207_v26 = vld [vmem:[%s592_s2 + $0x10] sm:$0xff] }
  0x12   : > { %243 = vmatpush.msra.mxu0 %v399_v9  ;;  %179 = vst.msk [vmem:[#allocation2 + $0x9] sm:$0xff] %vm177_vm2, %v451_v6  ;;  %v413_v27 = vld [vmem:[%s592_s2 + $0xc0] sm:$0xff]  ;;  %311 = vmatpush.msra.mxu2 %v414_v24  ;;  %v395_v28 = vld [vmem:[%s592_s2 + $0x50] sm:$0xff]  ;;  %v206_v29 = vld [vmem:[%s592_s2 + $0x8] sm:$0xff] }
  0x13   : > { %272 = vmatpush.msra.mxu1 %v210_v13  ;;  %425 = vmatpush.msra.mxu3 %v399_v9  ;;  %v190_v19 = vmax.f32 %v188_v17, 0.0  ;;  %v191_v21 = vmax.f32 %v189_v20, 0.0  ;;  %v412_v30 = vld [vmem:[%s592_s2 + $0xb8] sm:$0xff]  ;;  %v394_v31 = vld [vmem:[%s592_s2 + $0x48] sm:$0xff]  ;;  %v205_v32 = vld [vmem:[%s592_s2] sm:$0xff] }
  0x14   : > { %244 = vmatpush.msra.mxu0 %v398_v15  ;;  %312 = vmatpush.msra.mxu2 %v413_v27  ;;  %v411_v33 = vld [vmem:[%s592_s2 + $0xb0] sm:$0xff]  ;;  %v410_v34 = vld [vmem:[%s592_s2 + $0xa8] sm:$0xff]  ;;  %v409_v35 = vld [vmem:[%s592_s2 + $0xa0] sm:$0xff] }
  0x15   : > { %273 = vmatpush.msra.mxu1 %v209_v16  ;;  %426 = vmatpush.msra.mxu3 %v398_v15  ;;  %v408_v36 = vld [vmem:[%s592_s2 + $0x98] sm:$0xff]  ;;  %v407_v37 = vld [vmem:[%s592_s2 + $0x90] sm:$0xff] }
  0x16   : > { %194 = vrot.lane.b32.xlu0 %v190_v19, %s452_s19  ;;  %245 = vmatpush.msra.mxu0 %v397_v22 }
  0x17   : > { %274 = vmatpush.msra.mxu1 %v208_v23  ;;  %427 = vmatpush.msra.mxu3 %v397_v22 }
  0x18   : > { %246 = vmatpush.msra.mxu0 %v396_v25  ;;  %313 = vmatpush.msra.mxu2 %v412_v30 }
  0x19   : > { %275 = vmatpush.msra.mxu1 %v207_v26  ;;  %428 = vmatpush.msra.mxu3 %v396_v25 }
  0x1a   : > { %247 = vmatpush.msra.mxu0 %v395_v28  ;;  %314 = vmatpush.msra.mxu2 %v411_v33 }
  0x1b   : > { %276 = vmatpush.msra.mxu1 %v206_v29  ;;  %429 = vmatpush.msra.mxu3 %v395_v28 }
  0x1c   : > { %248 = vmatpush.msra.mxu0 %v394_v31  ;;  %315 = vmatpush.msra.mxu2 %v410_v34 }
  0x1d   : > { %277 = vmatpush.msra.mxu1 %v205_v32  ;;  %430 = vmatpush.msra.mxu3 %v394_v31 }
  0x1e   : > { %196 = vrot.lane.b32.xlu0 %v191_v21, %s452_s19  ;;  %316 = vmatpush.msra.mxu2 %v409_v35 }
  0x20   : > { %317 = vmatpush.msra.mxu2 %v408_v36 }
  0x22   : > { %318 = vmatpush.msra.mxu2 %v407_v37 }
  0x88   : > { %v195_v38 = vpop.permute.xlu0 %194 }
  0x89   : > { %201 = vst.msk [vmem:[#allocation2 + $0x1] sm:$0xff] %vm200_vm3, %v195_v38 }
  0x90   : > { %v197_v39 = vpop.permute.xlu0 %196  ;;  %v214_v40 = vld [vmem:[#allocation2 + $0x1] sm:$0xff] }
  0x91   : > { %v203_v41 = vld [vmem:[#allocation2] sm:$0xff]  ;;  %202 = vst.msk [vmem:[#allocation2 + $0x9] sm:$0xff] %vm200_vm3, %v197_v39  ;;  %403 = vmatmul.msk.f32.vlgmr.msra.gmra.mxu0 %vm226_vm4, %v214_v40 }
  0x92   : > { %405 = vmatmul.msk.f32.vlgmr.msra.gmra.mxu1 %vm226_vm4, %v203_v41 }
  0x98   : > { %v215_v42 = vld [vmem:[#allocation2 + $0x9] sm:$0xff] }
  0x99   : > { %v204_v43 = vld [vmem:[#allocation2 + $0x8] sm:$0xff]  ;;  %404 = vmatmul.msk.f32.vlgmr.msra.gmra.mxu3 %vm226_vm4, %v215_v42 }
  0x9a   : > { %v285_v44 = vld [vmem:[#allocation2 + $0x2] sm:$0xff]  ;;  %406 = vmatmul.msk.f32.gmra.mxu1 %vm226_vm4, %v204_v43  ;;  %v286_v45 = vld [vmem:[#allocation2 + $0xa] sm:$0xff] }
  0x9b   : > { %416 = vmatmul.msk.f32.vlgmr.msra.gmra.mxu2 %vm226_vm4, %v285_v44 }
  0xa3   : > { %417 = vmatmul.msk.f32.gmra.mxu2 %vm226_vm4, %v286_v45 }
 0x10e   : > { %v250_v46 = vpop.f32.mrf.mxu0 }
 0x10f   : > { %v279_v47 = vpop.f32.mrf.mxu1 }
 0x110   : > { %v280_v48 = vadd.f32 %v279_v47, %v250_v46 }
 0x117   : > { %v282_v52 = vpop.f32.mrf.mxu1 }
 0x11c   : > { %v253_v51 = vpop.f32.mrf.mxu3 }
 0x11d   : > { %v283_v53 = vadd.f32 %v282_v52, %v253_v51 }
 0x11e   : > { %v320_v49 = vpop.f32.mrf.mxu2 }
 0x11f   : > { %v326_v50 = vadd.f32 %v320_v49, %v280_v48 }
 0x121   : > { %328 = vst [vmem:[%s170_s4] sm:$0xff] %v326_v50 }
 0x126   : > { %v323_v54 = vpop.f32.mrf.mxu2 }
 0x127   : > { %v327_v55 = vadd.f32 %v323_v54, %v283_v53 }
 0x129   : > { %329 = vst [vmem:[%s170_s4 + $0x8] sm:$0xff] %v327_v55 }
 0x12a PF: > { %s13_s12 = sadd.s32 1, %s449_s12  }
 0x12b   : > { %p10_p4 = scmp.ge.s32.totalorder %s13_s12, 4  }
 0x12d   :  { %12 = sbr.rel (!%p10_p4) target bundleno = 1 (0x1), region = 64 }

</bundles_post_ra>
